<compile_context>
chip_gen: v7x
topology: tpu7x:2x2x1
jax: 0.10.0
libtpu: 0.0.40
codegen_flags: <defaults>
</compile_context>

<pallas_src>
import jax
import jax.numpy as jnp
from jax import lax
from jax.experimental import pallas as pl
from jax.experimental.pallas import tpu as pltpu


def _round_up(x, m):
    return ((x + m - 1) // m) * m


def _tile_body(logits, labels, valid, batch, out_ref):
    """Per-tile ATP-loss math. `logits`/`labels` are (TB, L) f32, `valid` is a
    (TB, L) bool validity mask or None (mask-free variant)."""
    tb, L = logits.shape
    col = lax.broadcasted_iota(jnp.int32, (tb, L), 1)

    if valid is not None:
        logits = jnp.where(valid, logits, jnp.float32(-1e30))

    th = logits[:, 0:1]                          # (TB, 1) — broadcast implicitly
    labels = jnp.where(col == 0, 0.0, labels)    # labels[:, 0] = 0

    # Pairwise log-softmax over the {logit, threshold} pair via one stable softplus:
    #   pos_log0 = lse - logits = softplus(-d)
    #   neg_log0 = lse - th     = softplus(-d) + d,   d = logits - th
    d = logits - th
    sp = jnp.where(d < 0.0, -d, 0.0) + jnp.log1p(jnp.exp(-jnp.abs(d)))

    # loss1: positive-label term, mean-normalized per row.
    loss1 = jnp.sum(sp * labels, axis=1, keepdims=True)                 # (TB, 1)
    labels_count = jnp.sum(labels, axis=1, keepdims=True) + 1e-7
    loss1 = loss1 / labels_count

    # loss2: negative-label term.
    n_mask = 1.0 - labels
    n_mask = jnp.where(col == 0, 0.0, n_mask)
    if valid is not None:
        n_mask = jnp.where(valid, n_mask, 0.0)
    loss2 = jnp.sum((sp + d) * n_mask, axis=1, keepdims=True)           # (TB, 1)
    neg_count = jnp.sum(n_mask, axis=1, keepdims=True) + 1e-7
    loss2 = loss2 / neg_count

    per_row = loss1 + loss2                                             # (TB, 1)

    # Zero contributions from batch-padding rows (global row >= real batch).
    row = lax.broadcasted_iota(jnp.int32, (tb, 1), 0) + pl.program_id(0) * tb
    per_row = jnp.where(row < batch, per_row, 0.0)
    partial = jnp.sum(per_row)                  # scalar partial sum for this tile

    # Lane-dense (8,128) output block; only [0,0] carries the partial sum.
    r8 = lax.broadcasted_iota(jnp.int32, (8, 128), 0)
    c8 = lax.broadcasted_iota(jnp.int32, (8, 128), 1)
    out_ref[...] = jnp.where((r8 == 0) & (c8 == 0), partial, 0.0)


def _make_kernel(batch, has_mask):
    if has_mask:
        def kernel(logits_ref, labels_ref, mask_ref, out_ref):
            _tile_body(logits_ref[...].astype(jnp.float32),
                       labels_ref[...].astype(jnp.float32),
                       mask_ref[...] != 0,
                       batch, out_ref)
    else:
        def kernel(logits_ref, labels_ref, out_ref):
            _tile_body(logits_ref[...].astype(jnp.float32),
                       labels_ref[...].astype(jnp.float32),
                       None,
                       batch, out_ref)
    return kernel


def atp_loss(logits, labels, mask=None, reduction: str = "mean",
             max_block_rows: int = 512):
    """Pallas implementation of ATPLoss.forward (reduction='mean').

    logits/labels may be bf16 or f32 (upcast inside the kernel); mask (if given)
    may be any dtype — only `mask != 0` matters, it is streamed as int8.
    """
    assert reduction == "mean"  # TODO(synk): 'sum'/'none' reductions not wired up
    B, L = logits.shape
    assert labels.shape == (B, L)

    # --- batch tiling: full L on the lane axis, TB rows per grid step ---------
    # Keep the f32 logits block near ~2 MiB so the double-buffered inputs plus
    # in-kernel temporaries fit default scoped VMEM on v5e (16 MiB) and v7x.
    rows_budget = max(8, (2 * 1024 * 1024 // max(1, L * 4)) // 8 * 8)
    tb = min(_round_up(B, 8), rows_budget, max_block_rows)
    tb = max(8, (tb // 8) * 8)
    b_pad = _round_up(B, tb)
    num_tiles = b_pad // tb

    def pad_rows(x):
        return x if b_pad == B else jnp.pad(x, ((0, b_pad - B), (0, 0)))

    args = [pad_rows(logits), pad_rows(labels)]
    in_specs = [pl.BlockSpec((tb, L), lambda i: (i, 0)),
                pl.BlockSpec((tb, L), lambda i: (i, 0))]
    bytes_per_elem = logits.dtype.itemsize + labels.dtype.itemsize
    if mask is not None:
        args.append(pad_rows((mask != 0).astype(jnp.int8)))
        in_specs.append(pl.BlockSpec((tb, L), lambda i: (i, 0)))
        bytes_per_elem += 1

    out_shape = jax.ShapeDtypeStruct((num_tiles * 8, 128), jnp.float32)
    out_spec = pl.BlockSpec((8, 128), lambda i: (i, 0))

    # 2x-buffered inputs + headroom, clamped so it is safe on every generation
    # (v7x physical VMEM is only 64 MiB).
    vmem_limit = int(min(32 * 1024 * 1024,
                         max(16 * 1024 * 1024,
                             4 * tb * L * bytes_per_elem + (4 << 20))))

    cost = pl.CostEstimate(
        flops=12 * b_pad * L,
        transcendentals=2 * b_pad * L,            # exp + log1p per element
        bytes_accessed=b_pad * L * bytes_per_elem + num_tiles * 8 * 128 * 4,
    )

    partials = pl.pallas_call(
        _make_kernel(B, mask is not None),
        out_shape=out_shape,
        grid_spec=pltpu.PrefetchScalarGridSpec(
            num_scalar_prefetch=0,
            grid=(num_tiles,),
            in_specs=in_specs,
            out_specs=out_spec,
        ),
        compiler_params=pltpu.CompilerParams(
            dimension_semantics=("parallel",),
            vmem_limit_bytes=vmem_limit,
        ),
        cost_estimate=cost,
    )(*args)

    return jnp.sum(partials) / B


def atp_loss_ref(logits, labels, mask=None):
    """Pure-JAX reference mirroring the PyTorch semantics (for sanity check)."""
    logits = logits.astype(jnp.float32)
    labels = labels.astype(jnp.float32)
    B, L = logits.shape
    if mask is not None:
        logits = jnp.where(mask == 0, -1e30, logits)
    th = jnp.broadcast_to(logits[:, 0:1], (B, L))
    labels = labels.at[:, 0].set(0.0)
    m = jnp.maximum(logits, th)
    lse = m + jnp.log(jnp.exp(logits - m) + jnp.exp(th - m))
    loss1 = jnp.sum((lse - logits) * labels, 1) / (labels.sum(1) + 1e-7)
    n_mask = 1.0 - labels
    n_mask = n_mask.at[:, 0].set(0.0)
    if mask is not None:
        n_mask = jnp.where(mask == 0, 0.0, n_mask)
    loss2 = jnp.sum((lse - th) * n_mask, 1) / (n_mask.sum(1) + 1e-7)
    return jnp.mean(loss1 + loss2)


if __name__ == "__main__":
    key = jax.random.PRNGKey(0)
    k1, k2, k3, k4, k5 = jax.random.split(key, 5)

    # Case 1: masked input, B a multiple of the sublane tile.
    B, L = 8, 128
    logits = jax.random.normal(k1, (B, L), dtype=jnp.float32)
    labels = jax.random.bernoulli(k2, p=0.3, shape=(B, L)).astype(jnp.float32)
    mask = jax.random.bernoulli(k3, p=0.9, shape=(B, L)).astype(jnp.float32)
    mask = mask.at[:, 0].set(1.0)          # keep threshold column valid
    labels = labels * mask                 # labels are 0 wherever mask == 0

    out = atp_loss(logits, labels, mask)
    jax.block_until_ready(out)
    ref = atp_loss_ref(logits, labels, mask)
    assert jnp.allclose(out, ref, rtol=1e-5, atol=1e-5), (out, ref)

    # Case 2: no mask (mask-free kernel variant) + batch padding path (B=5 -> 8).
    B2, L2 = 5, 128
    logits2 = jax.random.normal(k4, (B2, L2), dtype=jnp.float32)
    labels2 = jax.random.bernoulli(k5, p=0.3, shape=(B2, L2)).astype(jnp.float32)

    out2 = atp_loss(logits2, labels2, None)
    jax.block_until_ready(out2)
    ref2 = atp_loss_ref(logits2, labels2, None)
    assert jnp.allclose(out2, ref2, rtol=1e-5, atol=1e-5), (out2, ref2)

    print("KERNEL_OK")
</pallas_src>

<mosaic_0001>
module attributes {stable_mosaic.version = 11 : i64} {
  func.func @kernel(%arg0: i32, %arg1: memref<8x128xf32, #tpu.memory_space<vmem>>, %arg2: memref<8x128xf32, #tpu.memory_space<vmem>>, %arg3: memref<8x128xi8, #tpu.memory_space<vmem>>, %arg4: memref<8x128xf32, #tpu.memory_space<vmem>>) attributes {dimension_semantics = [#tpu.dimension_semantics<parallel>], iteration_bounds = array<i64: 1>, scalar_prefetch = 0 : i64, scratch_operands = 0 : i64, tpu.core_type = #tpu.core_type<tc>, window_params = [{transform_indices = @transform_0, window_bounds = array<i64: 8, 128>}, {transform_indices = @transform_1, window_bounds = array<i64: 8, 128>}, {transform_indices = @transform_2, window_bounds = array<i64: 8, 128>}, {transform_indices = @transform_3, window_bounds = array<i64: 8, 128>}]} {
    %c0 = arith.constant 0 : index
    %c0_0 = arith.constant 0 : index
    %0 = vector.load %arg1[%c0, %c0_0] : memref<8x128xf32, #tpu.memory_space<vmem>>, vector<8x128xf32>
    %c0_1 = arith.constant 0 : index
    %c0_2 = arith.constant 0 : index
    %1 = vector.load %arg2[%c0_1, %c0_2] : memref<8x128xf32, #tpu.memory_space<vmem>>, vector<8x128xf32>
    %c0_3 = arith.constant 0 : index
    %c0_4 = arith.constant 0 : index
    %2 = vector.load %arg3[%c0_3, %c0_4] : memref<8x128xi8, #tpu.memory_space<vmem>>, vector<8x128xi8>
    %c0_i8 = arith.constant 0 : i8
    %3 = vector.broadcast %c0_i8 : i8 to vector<8x128xi8>
    %4 = arith.cmpi ne, %2, %3 : vector<8x128xi8>
    %5 = tpu.iota {dimensions = array<i32: 1>} : vector<8x128xi32>
    %cst = arith.constant -1.000000e+30 : f32
    %6 = vector.broadcast %cst : f32 to vector<8x128xf32>
    %7 = arith.select %4, %0, %6 : vector<8x128xi1>, vector<8x128xf32>
    %8 = vector.extract_strided_slice %7 {offsets = [0, 0], sizes = [8, 1], strides = [1, 1]} : vector<8x128xf32> to vector<8x1xf32>
    %c0_i32 = arith.constant 0 : i32
    %9 = vector.broadcast %c0_i32 : i32 to vector<8x128xi32>
    %10 = arith.cmpi eq, %5, %9 : vector<8x128xi32>
    %cst_5 = arith.constant 0.000000e+00 : f32
    %11 = vector.broadcast %cst_5 : f32 to vector<8x128xf32>
    %12 = arith.select %10, %11, %1 : vector<8x128xi1>, vector<8x128xf32>
    %13 = vector.broadcast %8 : vector<8x1xf32> to vector<8x128xf32>
    %14 = arith.subf %7, %13 : vector<8x128xf32>
    %cst_6 = arith.constant 0.000000e+00 : f32
    %15 = vector.broadcast %cst_6 : f32 to vector<8x128xf32>
    %16 = arith.cmpf olt, %14, %15 : vector<8x128xf32>
    %cst_7 = arith.constant 0.000000e+00 : f32
    %17 = vector.broadcast %cst_7 : f32 to vector<8x128xf32>
    %18 = arith.subf %17, %14 : vector<8x128xf32>
    %cst_8 = arith.constant 0.000000e+00 : f32
    %19 = vector.broadcast %cst_8 : f32 to vector<8x128xf32>
    %20 = arith.select %16, %18, %19 : vector<8x128xi1>, vector<8x128xf32>
    %21 = math.absf %14 : vector<8x128xf32>
    %cst_9 = arith.constant 0.000000e+00 : f32
    %22 = vector.broadcast %cst_9 : f32 to vector<8x128xf32>
    %23 = arith.subf %22, %21 : vector<8x128xf32>
    %24 = math.exp %23 : vector<8x128xf32>
    %25 = math.log1p %24 : vector<8x128xf32>
    %26 = arith.addf %20, %25 : vector<8x128xf32>
    %27 = arith.mulf %26, %12 : vector<8x128xf32>
    %cst_10 = arith.constant dense<0.000000e+00> : vector<8xf32>
    %28 = vector.multi_reduction <add>, %27, %cst_10 [1] : vector<8x128xf32> to vector<8xf32>
    %29 = vector.shape_cast %28 : vector<8xf32> to vector<8x1xf32>
    %cst_11 = arith.constant dense<0.000000e+00> : vector<8xf32>
    %30 = vector.multi_reduction <add>, %12, %cst_11 [1] : vector<8x128xf32> to vector<8xf32>
    %31 = vector.shape_cast %30 : vector<8xf32> to vector<8x1xf32>
    %cst_12 = arith.constant 1.000000e-07 : f32
    %32 = vector.broadcast %cst_12 : f32 to vector<8x1xf32>
    %33 = arith.addf %31, %32 : vector<8x1xf32>
    %34 = arith.divf %29, %33 : vector<8x1xf32>
    %cst_13 = arith.constant 1.000000e+00 : f32
    %35 = vector.broadcast %cst_13 : f32 to vector<8x128xf32>
    %36 = arith.subf %35, %12 : vector<8x128xf32>
    %c0_i32_14 = arith.constant 0 : i32
    %37 = vector.broadcast %c0_i32_14 : i32 to vector<8x128xi32>
    %38 = arith.cmpi eq, %5, %37 : vector<8x128xi32>
    %cst_15 = arith.constant 0.000000e+00 : f32
    %39 = vector.broadcast %cst_15 : f32 to vector<8x128xf32>
    %40 = arith.select %38, %39, %36 : vector<8x128xi1>, vector<8x128xf32>
    %cst_16 = arith.constant 0.000000e+00 : f32
    %41 = vector.broadcast %cst_16 : f32 to vector<8x128xf32>
    %42 = arith.select %4, %40, %41 : vector<8x128xi1>, vector<8x128xf32>
    %43 = arith.addf %26, %14 : vector<8x128xf32>
    %44 = arith.mulf %43, %42 : vector<8x128xf32>
    %cst_17 = arith.constant dense<0.000000e+00> : vector<8xf32>
    %45 = vector.multi_reduction <add>, %44, %cst_17 [1] : vector<8x128xf32> to vector<8xf32>
    %46 = vector.shape_cast %45 : vector<8xf32> to vector<8x1xf32>
    %cst_18 = arith.constant dense<0.000000e+00> : vector<8xf32>
    %47 = vector.multi_reduction <add>, %42, %cst_18 [1] : vector<8x128xf32> to vector<8xf32>
    %48 = vector.shape_cast %47 : vector<8xf32> to vector<8x1xf32>
    %cst_19 = arith.constant 1.000000e-07 : f32
    %49 = vector.broadcast %cst_19 : f32 to vector<8x1xf32>
    %50 = arith.addf %48, %49 : vector<8x1xf32>
    %51 = arith.divf %46, %50 : vector<8x1xf32>
    %52 = arith.addf %34, %51 : vector<8x1xf32>
    %53 = tpu.iota {dimensions = array<i32: 0>} : vector<8x1xi32>
    %c8_i32 = arith.constant 8 : i32
    %54 = arith.muli %arg0, %c8_i32 : i32
    %55 = vector.broadcast %54 : i32 to vector<8x1xi32>
    %56 = arith.addi %53, %55 : vector<8x1xi32>
    %c8_i32_20 = arith.constant 8 : i32
    %57 = vector.broadcast %c8_i32_20 : i32 to vector<8x1xi32>
    %58 = arith.cmpi slt, %56, %57 : vector<8x1xi32>
    %cst_21 = arith.constant 0.000000e+00 : f32
    %59 = vector.broadcast %cst_21 : f32 to vector<8x1xf32>
    %60 = arith.select %58, %52, %59 : vector<8x1xi1>, vector<8x1xf32>
    %61 = vector.shape_cast %60 : vector<8x1xf32> to vector<1x8x1xf32>
    %cst_22 = arith.constant dense<0.000000e+00> : vector<1xf32>
    %62 = vector.multi_reduction <add>, %61, %cst_22 [1, 2] : vector<1x8x1xf32> to vector<1xf32>
    %63 = vector.shape_cast %62 : vector<1xf32> to vector<1x1x1xf32>
    %64 = vector.extract %63[0, 0, 0] : f32 from vector<1x1x1xf32>
    %65 = tpu.iota {dimensions = array<i32: 0>} : vector<8x128xi32>
    %66 = tpu.iota {dimensions = array<i32: 1>} : vector<8x128xi32>
    %c0_i32_23 = arith.constant 0 : i32
    %67 = vector.broadcast %c0_i32_23 : i32 to vector<8x128xi32>
    %68 = arith.cmpi eq, %65, %67 : vector<8x128xi32>
    %c0_i32_24 = arith.constant 0 : i32
    %69 = vector.broadcast %c0_i32_24 : i32 to vector<8x128xi32>
    %70 = arith.cmpi eq, %66, %69 : vector<8x128xi32>
    %71 = arith.andi %68, %70 : vector<8x128xi1>
    %cst_25 = arith.constant 0.000000e+00 : f32
    %72 = vector.broadcast %64 : f32 to vector<8x128xf32>
    %73 = vector.broadcast %cst_25 : f32 to vector<8x128xf32>
    %74 = arith.select %71, %72, %73 : vector<8x128xi1>, vector<8x128xf32>
    %c0_26 = arith.constant 0 : index
    %c0_27 = arith.constant 0 : index
    %75 = vector.load %arg4[%c0_26, %c0_27] : memref<8x128xf32, #tpu.memory_space<vmem>>, vector<8x128xf32>
    tpu.vector_store %arg4[%c0_26, %c0_27], %74 {strides = array<i32>} : memref<8x128xf32, #tpu.memory_space<vmem>>, vector<8x128xf32>,
    return
  }
  func.func @transform_0(%arg0: i32) -> (i32, i32) {
    %c0_i32 = arith.constant 0 : i32
    %c0_i32_0 = arith.constant 0 : i32
    return %arg0, %c0_i32 : i32, i32
  }
  func.func @transform_1(%arg0: i32) -> (i32, i32) {
    %c0_i32 = arith.constant 0 : i32
    %c0_i32_0 = arith.constant 0 : i32
    return %arg0, %c0_i32 : i32, i32
  }
  func.func @transform_2(%arg0: i32) -> (i32, i32) {
    %c0_i32 = arith.constant 0 : i32
    %c0_i32_0 = arith.constant 0 : i32
    return %arg0, %c0_i32 : i32, i32
  }
  func.func @transform_3(%arg0: i32) -> (i32, i32) {
    %c0_i32 = arith.constant 0 : i32
    %c0_i32_0 = arith.constant 0 : i32
    return %arg0, %c0_i32 : i32, i32
  }
}

</mosaic_0001>

<bundles_post_ra>
// kernel: tpu_custom_call.1
= control target key start
LH: loop header
LB: loop body
LE: loop exit
PB: predicated region body
PF: predicated region fallthrough
CT: control target
= control target key end

     0   :  { %8 = vsyncpa [#allocation3], 0  ;;  %s289_s0 = inlined_call_operand.hbm [shape: f32[8,128], index: 0, kind: input, shape index: {}]   ;;  %s290_s1 = inlined_call_operand.hbm [shape: f32[8,128], index: 1, kind: input, shape index: {}]   ;;  %s291_s2 = inlined_call_operand.vmem [shape: s8[8,128], index: 2, kind: input, shape index: {}]   ;;  %s292_s3 = inlined_call_operand.hbm [shape: f32[8,128], index: 3, kind: output, shape index: {}]  }
   0x1   :  { %9 = vsyncpa [#allocation6], 0 }
   0x2   :  { %10 = vsyncpa [#allocation4], 0  ;;  %s223_s12 = smov [#allocation2]   ;;  %s224_s14 = smov [#allocation5]  }
   0x3   :  { %s17_s13 = sshll.u32 %s223_s12, 4  ;;  %s27_s15 = sshll.u32 %s224_s14, 4  ;;  %s18_s13 = int_to_ptr.vmem [resolvable:$true] %s17_s13  ;;  %s28_s15 = int_to_ptr.vmem [resolvable:$true] %s27_s15 }
   0x4   :  { %s151_s18 = scalar_lea.hbm %s289_s0, 128 }
   0x5   :  { %p152_p0 = scmp.ne.s32.totalorder %s289_s0, %s151_s18  ;;  %p155_p1 = scmp.lt.u32.totalorder %s151_s18, %s289_s0 }
   0x7   :  { %p157_p2 = pnand %p155_p1, %p152_p0 }
   0x9   :  { %160 = shalt.err (!%p157_p2)
}
   0xa   :  { %s161_s23 = scalar_lea.vmem %s18_s13, 128  ;;  %p166_p4 = scmp.lt.s32.totalorder %s18_s13, %s18_s13 }
   0xb   :  { %p162_p3 = scmp.ne.s32.totalorder %s18_s13, %s161_s23  ;;  %p167_p5 = scmp.lt.s32.totalorder %s161_s23, %s161_s23 }
   0xd   :  { %p168_p6 = por %p167_p5, %p166_p4 }
   0xf   :  { %p169_p7 = pnand %p168_p6, %p162_p3 }
  0x11   :  { %172 = shalt.err (!%p169_p7)
}
  0x12   :  { %20 = dma.hbm_to_vmem [thread:$0]  %s289_s0, 128, %s18_s13, [#allocation3]  }
  0x13   :  { %s173_s28 = scalar_lea.hbm %s290_s1, 128 }
  0x14   :  { %p174_p8 = scmp.ne.s32.totalorder %s290_s1, %s173_s28  ;;  %p177_p9 = scmp.lt.u32.totalorder %s173_s28, %s290_s1 }
  0x16   :  { %p179_p10 = pnand %p177_p9, %p174_p8 }
  0x18   :  { %182 = shalt.err (!%p179_p10)
}
  0x19   :  { %s183_s6 = scalar_lea.vmem %s28_s15, 128  ;;  %p188_p12 = scmp.lt.s32.totalorder %s28_s15, %s28_s15 }
  0x1a   :  { %p184_p11 = scmp.ne.s32.totalorder %s28_s15, %s183_s6  ;;  %p189_p13 = scmp.lt.s32.totalorder %s183_s6, %s183_s6 }
  0x1c   :  { %p190_p0 = por %p189_p13, %p188_p12 }
  0x1e   :  { %p191_p1 = pnand %p190_p0, %p184_p11 }
  0x20   :  { %194 = shalt.err (!%p191_p1)
}
  0x21   :  { %30 = dma.hbm_to_vmem [thread:$0]  %s290_s1, 128, %s28_s15, [#allocation6]  }
  0x22   :  { %217 = dma.done.wait [#allocation3], 128  }
  0x23   :  { %218 = vsyncadd [#allocation3], 4294967168 }
  0x24   :  { %219 = dma.done.wait [#allocation6], 128  }
  0x25   :  { %220 = vsyncadd [#allocation6], 4294967168  ;;  %v225_v0 = vmov 0   ;;  %v43_v1 = vld [vmem:[%s291_s2] sm:$0x3]  ;;  %v45_v6 = vlaneseq  ;;  %v42_v7 = vld [vmem:[#allocation5] sm:$0xff] }
  0x26   :  { %142 = vset.pattern.permute.xlu0 %v225_v0  ;;  %vm44_vm0 = vnez %v43_v1  ;;  %v41_v4 = vld [vmem:[#allocation2] sm:$0xff]  ;;  %vm104_vm5 = vcmask 7168   ;;  %s226_s1 = smov [#allocation7]  }
  0x27   :  { %v47_v2 = vsel %vm44_vm0, 16843009, %v225_v0  ;;  %v46_v8 = vand.u32 127, %v45_v6  ;;  %v98_v52 = vshrl.u32 %v45_v6, 7  ;;  %s126_s2 = sshll.u32 %s226_s1, 4  ;;  %s127_s2 = int_to_ptr.vmem [resolvable:$true] %s126_s2 }
  0x28   :  { %v48_v3 = vunpack.c.0.s8 %v47_v2  ;;  %s195_s11 = scalar_lea.vmem %s127_s2, 128  ;;  %p200_p3 = scmp.lt.s32.totalorder %s127_s2, %s127_s2 }
  0x29   :  { %vm51_vm2 = vcmp.eq.s32.totalorder %v46_v8, 0  ;;  %vm115_vm6 = vcmp.eq.s32.totalorder %v98_v52, 0  ;;  %p196_p2 = scmp.ne.s32.totalorder %s127_s2, %s195_s11  ;;  %p201_p4 = scmp.lt.s32.totalorder %s195_s11, %s195_s11 }
  0x2a   :  { %vm49_vm1 = vcmp.ne.s32.totalorder %v48_v3, 0  ;;  %v52_v9 = vsel %vm51_vm2, 0.0, %v42_v7  ;;  %vm116_vm7 = vmand %vm115_vm6, %vm51_vm2 }
  0x2b   :  { %v50_v5 = vsel %vm49_vm1, %v41_v4, -1e+30  ;;  %v84_v10 = vsub.f32 1.0, %v52_v9  ;;  %p202_p5 = por %p201_p4, %p200_p3 }
  0x2c   :  { %55 = vperm.xlu0 %142, %v50_v5  }
  0x2d   :  { %v85_v11 = vsel %vm51_vm2, 0.0, %v84_v10  ;;  %p203_p6 = pnand %p202_p5, %p196_p2 }
  0x2e   :  { %v86_v12 = vsel %vm49_vm1, %v85_v11, 0.0 }
  0x2f   :  { %91 = vadd.xlane.f32.xlu1 %v86_v12 }
  0x4b   :  { %79 = vadd.xlane.f32.xlu0 %v52_v9 }
  0xab   :  { %v56_v13 = vpop.permute.xlu0 %55 }
  0xac   :  { %v58_v14 = vsub.f32 %v50_v5, %v56_v13 }
  0xae   :  { %v62_v15 = vand.u32 2147483647, %v58_v14  ;;  %v60_v23 = vsub.f32 0.0, %v58_v14  ;;  %vm59_vm3 = vcmp.lt.f32.partialorder %v58_v14, 0.0 }
  0xb0   :  { %v63_v16 = vsub.f32 0.0, %v62_v15  ;;  %v61_v27 = vsel %vm59_vm3, %v60_v23, 0.0 }
  0xb2   :  { %v64_v17 = vmul.f32 1.442695, %v63_v16 }
  0xb4   :  { %143 = vpow2.f32 %v64_v17 }
  0xbc   :  { %v92_v33 = vpop.xlane.xlu1 %91 }
  0xbd   :  { %v93_v35 = vadd.f32 1e-07, %v92_v33 }
  0xbe   :  { %v144_v18 = vpop.eup %143 }
  0xbf   :  { %v66_v19 = vadd.f32 1.0, %v144_v18  ;;  %v69_v20 = vmul.f32 -0.5, %v144_v18  ;;  %v72_v22 = vand.u32 2147483647, %v144_v18 }
  0xc1   :  { %145 = vlog2.f32 %v66_v19  ;;  %v70_v21 = vadd.f32 1.0, %v69_v20  ;;  %vm73_vm4 = vcmp.lt.f32.partialorder %v72_v22, 0.0004427343 }
  0xc2   :  { %147 = vrcp.f32 %v93_v35 }
  0xc3   :  { %v71_v26 = vmul.f32 %v144_v18, %v70_v21 }
  0xcb   :  { %v146_v24 = vpop.eup %145 }
  0xcc   :  { %v68_v25 = vmul.f32 0.6931472, %v146_v24  ;;  %v148_v38 = vpop.eup %147 }
  0xce   :  { %v74_v28 = vsel %vm73_vm4, %v71_v26, %v68_v25 }
  0xcf   :  { %v75_v29 = vadd.f32 %v74_v28, %v61_v27 }
  0xd1   :  { %v76_v30 = vmul.f32 %v75_v29, %v52_v9  ;;  %v87_v31 = vadd.f32 %v75_v29, %v58_v14 }
  0xd3   :  { %77 = vadd.xlane.f32.xlu1 %v76_v30  ;;  %v88_v32 = vmul.f32 %v87_v31, %v86_v12 }
  0xd7   :  { %89 = vadd.xlane.f32.xlu1 %v88_v32 }
  0xd8   :  { %v80_v34 = vpop.xlane.xlu0 %79 }
  0xd9   :  { %v81_v36 = vadd.f32 1e-07, %v80_v34 }
  0xdb   :  { %149 = vrcp.f32 %v81_v36 }
  0xe5   :  { %v150_v39 = vpop.eup %149 }
 0x160   :  { %v78_v37 = vpop.xlane.xlu1 %77 }
 0x161   :  { %v83_v41 = vmul.f32 %v150_v39, %v78_v37 }
 0x164   :  { %v90_v40 = vpop.xlane.xlu1 %89 }
 0x165   :  { %v95_v42 = vmul.f32 %v148_v38, %v90_v40 }
 0x167   :  { %v96_v43 = vadd.f32 %v95_v42, %v83_v41 }
 0x169   :  { %v105_v44 = vsel %vm104_vm5, %v96_v43, 0.0 }
 0x16a   :  { %106 = vadd.xlane.f32.xlu1 %v105_v44 }
 0x1f7   :  { %v107_v45 = vpop.xlane.xlu1 %106 }
 0x1f8   :  { %v108_v46 = vrot.slane %v107_v45, 4 }
 0x1fa   :  { %v109_v47 = vadd.f32 %v108_v46, %v107_v45 }
 0x1fc   :  { %v110_v48 = vrot.slane %v109_v47, 2 }
 0x1fe   :  { %v111_v49 = vadd.f32 %v110_v48, %v109_v47 }
 0x200   :  { %v112_v50 = vrot.slane %v111_v49, 1 }
 0x202   :  { %v113_v51 = vadd.f32 %v112_v50, %v111_v49 }
 0x204   :  { %136 = vpush %v113_v51 }
 0x235   :  { %s137_s10 = spop %136 }
 0x236   :  { %v117_v53 = vstv %s137_s10 }
 0x237   :  { %v118_v54 = vsel %vm116_vm7, %v117_v53, 0.0 }
 0x238   :  { %119 = vst [vmem:[#allocation7] sm:$0xff] %v118_v54 }
 0x239   :  { %206 = shalt.err (!%p203_p6)
}
 0x23a   :  { %s207_s14 = scalar_lea.hbm %s292_s3, 128 }
 0x23b   :  { %p208_p7 = scmp.ne.s32.totalorder %s292_s3, %s207_s14  ;;  %p211_p8 = scmp.lt.u32.totalorder %s207_s14, %s292_s3 }
 0x23d   :  { %p213_p9 = pnand %p211_p8, %p208_p7 }
 0x23f   :  { %216 = shalt.err (!%p213_p9)
}
 0x240   :  { %129 = dma.vmem_to_hbm [thread:$0]  %s127_s2, 128, %s292_s3, [#allocation4]  }
 0x241   :  { %221 = dma.done.wait [#allocation4], 128  }
 0x242   :  { %222 = vsyncadd [#allocation4], 4294967168 }
 0x243   :  { %133 = vsyncpa [#allocation3], 1 }
 0x244   :  { %134 = vsyncpa [#allocation6], 1 }
 0x245   :  { %135 = vsyncpa [#allocation4], 1 }

</bundles_post_ra>
